<compile_context>
chip_gen: v5e
topology: v5e:2x2
jax: 0.10.0
libtpu: 0.0.40
codegen_flags: <defaults>
</compile_context>

<pallas_src>
import functools

import jax
import jax.numpy as jnp
from jax.experimental import pallas as pl
from jax.experimental.pallas import tpu as pltpu

LANES = 128          # padded width of every hidden / output feature dim
HID1, HID2, HID3 = 12, 12, 6


def _mlp_kernel(x_ref, w1_ref, wrest_ref, b_ref, o_ref):
    """Fused 4-layer MLP on one (TB, input_dim) batch tile.

    x_ref     : (TB, input_dim)      f32
    w1_ref    : (input_dim, 128)     f32   (fc1 weight, zero-padded columns)
    wrest_ref : (384, 128)           f32   (fc2 | fc3 | fc4, each 128x128)
    b_ref     : (4, 128)             f32   (b1..b4, zero-padded)
    o_ref     : (TB, output_dim)     f32
    """
    x = x_ref[...]
    b = b_ref[...]                                     # (4, 128)

    h = jnp.dot(x, w1_ref[...], preferred_element_type=jnp.float32) + b[0]
    h = jnp.maximum(h, 0.0)

    h = jnp.dot(h, wrest_ref[0:128, :], preferred_element_type=jnp.float32) + b[1]
    h = jnp.maximum(h, 0.0)

    h = jnp.dot(h, wrest_ref[128:256, :], preferred_element_type=jnp.float32) + b[2]
    h = jnp.maximum(h, 0.0)

    h = jnp.dot(h, wrest_ref[256:384, :], preferred_element_type=jnp.float32) + b[3]

    # Only the first output_dim lanes are real; slice before the (small) store.
    o_ref[...] = h[:, : o_ref.shape[1]].astype(o_ref.dtype)


def pack_params(params, input_dim, output_dim):
    """Zero-pad the logical (in, out) weights / (out,) biases to lane-dense
    128-wide layouts and pack them into 3 arrays."""
    f32 = jnp.float32

    w1 = jnp.zeros((input_dim, LANES), f32).at[:, :HID1].set(params["w1"])
    w2 = jnp.zeros((LANES, LANES), f32).at[:HID1, :HID2].set(params["w2"])
    w3 = jnp.zeros((LANES, LANES), f32).at[:HID2, :HID3].set(params["w3"])
    w4 = jnp.zeros((LANES, LANES), f32).at[:HID3, :output_dim].set(params["w4"])

    b = jnp.zeros((4, LANES), f32)
    b = b.at[0, :HID1].set(params["b1"])
    b = b.at[1, :HID2].set(params["b2"])
    b = b.at[2, :HID3].set(params["b3"])
    b = b.at[3, :output_dim].set(params["b4"])

    w_rest = jnp.concatenate([w2, w3, w4], axis=0)     # (384, 128)
    return w1, w_rest, b


@functools.partial(jax.jit, static_argnames=("output_dim",))
def network_forward(x, w1_p, wrest_p, b_p, *, output_dim):
    """Run the fused 4-layer MLP Pallas kernel.

    x: (batch, input_dim) float32; packed params from pack_params().
    """
    batch, input_dim = x.shape

    # Batch tile: whole batch if small, else 1024-row tiles (big tiles amortize
    # the ~0.35us/step overhead, small enough for v7x's 64 MiB VMEM).
    TB = batch if batch <= 1024 else 1024
    padded_batch = pl.cdiv(batch, TB) * TB
    if padded_batch != batch:
        x = jnp.pad(x, ((0, padded_batch - batch), (0, 0)))
    grid = (padded_batch // TB,)

    cost = pl.CostEstimate(
        flops=2 * batch * (input_dim * LANES + 3 * LANES * LANES),
        transcendentals=0,
        bytes_accessed=4 * (batch * input_dim + batch * output_dim
                            + input_dim * LANES + 3 * LANES * LANES + 4 * LANES),
    )

    out = pl.pallas_call(
        _mlp_kernel,
        out_shape=jax.ShapeDtypeStruct((padded_batch, output_dim), jnp.float32),
        grid=grid,
        in_specs=[
            pl.BlockSpec((TB, input_dim), lambda i: (i, 0)),      # x: batch-tiled
            pl.BlockSpec((input_dim, LANES), lambda i: (0, 0)),   # w1: resident
            pl.BlockSpec((3 * LANES, LANES), lambda i: (0, 0)),   # w2|w3|w4: resident
            pl.BlockSpec((4, LANES), lambda i: (0, 0)),           # biases: resident
        ],
        out_specs=pl.BlockSpec((TB, output_dim), lambda i: (i, 0)),
        compiler_params=pltpu.CompilerParams(
            dimension_semantics=("parallel",),
        ),
        cost_estimate=cost,
    )(x, w1_p, wrest_p, b_p)

    if padded_batch != batch:
        out = out[:batch]
    return out


def init_params(key, input_dim, output_dim):
    """Deterministic init matching PyTorch nn.Linear default:
    U(-1/sqrt(fan_in), 1/sqrt(fan_in)) for weight and bias.
    Weights stored as (in, out) so the kernel computes y = x @ W + b."""
    dims = [(input_dim, HID1), (HID1, HID2), (HID2, HID3), (HID3, output_dim)]
    params = {}
    for i, (fan_in, fan_out) in enumerate(dims, start=1):
        key, kw, kb = jax.random.split(key, 3)
        bound = 1.0 / float(fan_in) ** 0.5
        params[f"w{i}"] = jax.random.uniform(
            kw, (fan_in, fan_out), jnp.float32, minval=-bound, maxval=bound)
        params[f"b{i}"] = jax.random.uniform(
            kb, (fan_out,), jnp.float32, minval=-bound, maxval=bound)
    return params


def reference_forward(x, params):
    """Pure-JAX reference (unpadded) for correctness checking."""
    h = jnp.maximum(x @ params["w1"] + params["b1"], 0.0)
    h = jnp.maximum(h @ params["w2"] + params["b2"], 0.0)
    h = jnp.maximum(h @ params["w3"] + params["b3"], 0.0)
    return h @ params["w4"] + params["b4"]


if __name__ == "__main__":
    key = jax.random.PRNGKey(0)
    batch, input_dim, output_dim = 128, 32, 4

    key, kx = jax.random.split(key)
    x = jax.random.normal(kx, (batch, input_dim), jnp.float32)
    params = init_params(key, input_dim, output_dim)
    w1_p, wrest_p, b_p = pack_params(params, input_dim, output_dim)

    out = network_forward(x, w1_p, wrest_p, b_p, output_dim=output_dim)
    out = jax.block_until_ready(out)

    ref = reference_forward(x, params)
    assert out.shape == (batch, output_dim), out.shape
    assert jnp.allclose(out, ref, atol=1e-4, rtol=1e-4), "mismatch vs JAX reference"

    print("KERNEL_OK")
</pallas_src>

<mosaic_0001>
module attributes {stable_mosaic.version = 11 : i64} {
  func.func @_mlp_kernel(%arg0: i32, %arg1: memref<128x32xf32, #tpu.memory_space<vmem>>, %arg2: memref<32x128xf32, #tpu.memory_space<vmem>>, %arg3: memref<384x128xf32, #tpu.memory_space<vmem>>, %arg4: memref<4x128xf32, #tpu.memory_space<vmem>>, %arg5: memref<128x4xf32, #tpu.memory_space<vmem>>) attributes {dimension_semantics = [#tpu.dimension_semantics<parallel>], iteration_bounds = array<i64: 1>, scalar_prefetch = 0 : i64, scratch_operands = 0 : i64, tpu.core_type = #tpu.core_type<tc>, window_params = [{transform_indices = @transform_0, window_bounds = array<i64: 128, 32>}, {pipeline_mode = #tpu.pipeline_mode<synchronous>, transform_indices = @transform_1, window_bounds = array<i64: 32, 128>}, {pipeline_mode = #tpu.pipeline_mode<synchronous>, transform_indices = @transform_2, window_bounds = array<i64: 384, 128>}, {pipeline_mode = #tpu.pipeline_mode<synchronous>, transform_indices = @transform_3, window_bounds = array<i64: 4, 128>}, {transform_indices = @transform_4, window_bounds = array<i64: 128, 4>}]} {
    %c0 = arith.constant 0 : index
    %c0_0 = arith.constant 0 : index
    %0 = vector.load %arg1[%c0, %c0_0] : memref<128x32xf32, #tpu.memory_space<vmem>>, vector<128x32xf32>
    %c0_1 = arith.constant 0 : index
    %c0_2 = arith.constant 0 : index
    %1 = vector.load %arg4[%c0_1, %c0_2] : memref<4x128xf32, #tpu.memory_space<vmem>>, vector<4x128xf32>
    %c0_3 = arith.constant 0 : index
    %c0_4 = arith.constant 0 : index
    %2 = vector.load %arg2[%c0_3, %c0_4] : memref<32x128xf32, #tpu.memory_space<vmem>>, vector<32x128xf32>
    %cst = arith.constant dense<0.000000e+00> : vector<128x128xf32>
    %3 = tpu.matmul %0, %2, %cst {dimension_numbers = #tpu.dot_dimension_numbers<[1], [0], [0], [1], [0, 0, 1, 1], [], []>} : vector<128x32xf32>, vector<32x128xf32>, vector<128x128xf32> -> vector<128x128xf32>
    %4 = vector.extract_strided_slice %1 {offsets = [0, 0], sizes = [1, 128], strides = [1, 1]} : vector<4x128xf32> to vector<1x128xf32>
    %5 = vector.shape_cast %4 : vector<1x128xf32> to vector<128xf32>
    %6 = vector.shape_cast %5 : vector<128xf32> to vector<1x128xf32>
    %7 = vector.broadcast %6 : vector<1x128xf32> to vector<128x128xf32>
    %8 = arith.addf %3, %7 : vector<128x128xf32>
    %cst_5 = arith.constant 0.000000e+00 : f32
    %9 = vector.broadcast %cst_5 : f32 to vector<128x128xf32>
    %10 = arith.maximumf %8, %9 : vector<128x128xf32>
    %c0_6 = arith.constant 0 : index
    %c0_7 = arith.constant 0 : index
    %11 = vector.load %arg3[%c0_6, %c0_7] : memref<384x128xf32, #tpu.memory_space<vmem>>, vector<128x128xf32>
    %cst_8 = arith.constant dense<0.000000e+00> : vector<128x128xf32>
    %12 = tpu.matmul %10, %11, %cst_8 {dimension_numbers = #tpu.dot_dimension_numbers<[1], [0], [0], [1], [0, 0, 1, 1], [], []>} : vector<128x128xf32>, vector<128x128xf32>, vector<128x128xf32> -> vector<128x128xf32>
    %13 = vector.extract_strided_slice %1 {offsets = [1, 0], sizes = [1, 128], strides = [1, 1]} : vector<4x128xf32> to vector<1x128xf32>
    %14 = vector.shape_cast %13 : vector<1x128xf32> to vector<128xf32>
    %15 = vector.shape_cast %14 : vector<128xf32> to vector<1x128xf32>
    %16 = vector.broadcast %15 : vector<1x128xf32> to vector<128x128xf32>
    %17 = arith.addf %12, %16 : vector<128x128xf32>
    %cst_9 = arith.constant 0.000000e+00 : f32
    %18 = vector.broadcast %cst_9 : f32 to vector<128x128xf32>
    %19 = arith.maximumf %17, %18 : vector<128x128xf32>
    %c128 = arith.constant 128 : index
    %c0_10 = arith.constant 0 : index
    %20 = vector.load %arg3[%c128, %c0_10] : memref<384x128xf32, #tpu.memory_space<vmem>>, vector<128x128xf32>
    %cst_11 = arith.constant dense<0.000000e+00> : vector<128x128xf32>
    %21 = tpu.matmul %19, %20, %cst_11 {dimension_numbers = #tpu.dot_dimension_numbers<[1], [0], [0], [1], [0, 0, 1, 1], [], []>} : vector<128x128xf32>, vector<128x128xf32>, vector<128x128xf32> -> vector<128x128xf32>
    %22 = vector.extract_strided_slice %1 {offsets = [2, 0], sizes = [1, 128], strides = [1, 1]} : vector<4x128xf32> to vector<1x128xf32>
    %23 = vector.shape_cast %22 : vector<1x128xf32> to vector<128xf32>
    %24 = vector.shape_cast %23 : vector<128xf32> to vector<1x128xf32>
    %25 = vector.broadcast %24 : vector<1x128xf32> to vector<128x128xf32>
    %26 = arith.addf %21, %25 : vector<128x128xf32>
    %cst_12 = arith.constant 0.000000e+00 : f32
    %27 = vector.broadcast %cst_12 : f32 to vector<128x128xf32>
    %28 = arith.maximumf %26, %27 : vector<128x128xf32>
    %c256 = arith.constant 256 : index
    %c0_13 = arith.constant 0 : index
    %29 = vector.load %arg3[%c256, %c0_13] : memref<384x128xf32, #tpu.memory_space<vmem>>, vector<128x128xf32>
    %cst_14 = arith.constant dense<0.000000e+00> : vector<128x128xf32>
    %30 = tpu.matmul %28, %29, %cst_14 {dimension_numbers = #tpu.dot_dimension_numbers<[1], [0], [0], [1], [0, 0, 1, 1], [], []>} : vector<128x128xf32>, vector<128x128xf32>, vector<128x128xf32> -> vector<128x128xf32>
    %31 = vector.extract_strided_slice %1 {offsets = [3, 0], sizes = [1, 128], strides = [1, 1]} : vector<4x128xf32> to vector<1x128xf32>
    %32 = vector.shape_cast %31 : vector<1x128xf32> to vector<128xf32>
    %33 = vector.shape_cast %32 : vector<128xf32> to vector<1x128xf32>
    %34 = vector.broadcast %33 : vector<1x128xf32> to vector<128x128xf32>
    %35 = arith.addf %30, %34 : vector<128x128xf32>
    %36 = vector.extract_strided_slice %35 {offsets = [0, 0], sizes = [128, 4], strides = [1, 1]} : vector<128x128xf32> to vector<128x4xf32>
    %c0_15 = arith.constant 0 : index
    %c0_16 = arith.constant 0 : index
    %37 = vector.load %arg5[%c0_15, %c0_16] : memref<128x4xf32, #tpu.memory_space<vmem>>, vector<128x4xf32>
    tpu.vector_store %arg5[%c0_15, %c0_16], %36 {strides = array<i32>} : memref<128x4xf32, #tpu.memory_space<vmem>>, vector<128x4xf32>,
    return
  }
  func.func @transform_0(%arg0: i32) -> (i32, i32) {
    %c0_i32 = arith.constant 0 : i32
    %c0_i32_0 = arith.constant 0 : i32
    return %arg0, %c0_i32 : i32, i32
  }
  func.func @transform_1(%arg0: i32) -> (i32, i32) {
    %c0_i32 = arith.constant 0 : i32
    %c0_i32_0 = arith.constant 0 : i32
    %c0_i32_1 = arith.constant 0 : i32
    return %c0_i32, %c0_i32_0 : i32, i32
  }
  func.func @transform_2(%arg0: i32) -> (i32, i32) {
    %c0_i32 = arith.constant 0 : i32
    %c0_i32_0 = arith.constant 0 : i32
    %c0_i32_1 = arith.constant 0 : i32
    return %c0_i32, %c0_i32_0 : i32, i32
  }
  func.func @transform_3(%arg0: i32) -> (i32, i32) {
    %c0_i32 = arith.constant 0 : i32
    %c0_i32_0 = arith.constant 0 : i32
    %c0_i32_1 = arith.constant 0 : i32
    return %c0_i32, %c0_i32_0 : i32, i32
  }
  func.func @transform_4(%arg0: i32) -> (i32, i32) {
    %c0_i32 = arith.constant 0 : i32
    %c0_i32_0 = arith.constant 0 : i32
    return %arg0, %c0_i32 : i32, i32
  }
}

</mosaic_0001>

<bundles_post_ra>
// kernel: network_forward.1
= control target key start
LH: loop header
LB: loop body
LE: loop exit
PB: predicated region body
PF: predicated region fallthrough
CT: control target
= control target key end

     0   :  { %9 = vsyncpa [#allocation3], 0  ;;  %s530_s18 = smov [#allocation2]   ;;  %s531_s20 = smov 128   ;;  %s746_s0 = inlined_call_operand.vmem [shape: f32[128,32], index: 0, kind: input, shape index: {}]   ;;  %s747_s1 = inlined_call_operand.vmem [shape: f32[32,128], index: 1, kind: input, shape index: {}]   ;;  %s748_s2 = inlined_call_operand.hbm [shape: f32[384,128], index: 2, kind: input, shape index: {}]   ;;  %s749_s3 = inlined_call_operand.vmem [shape: f32[4,128], index: 3, kind: input, shape index: {}]   ;;  %s750_s4 = inlined_call_operand.vmem [shape: f32[128,4], index: 4, kind: output, shape index: {}]  }
   0x1   :  { %s18_s17 = sshll.u32 %s748_s2, 4  ;;  %s20_s19 = sshll.u32 %s530_s18, 4  ;;  %s19_s17 = int_to_ptr.hbm [resolvable:$true] %s18_s17  ;;  %s21_s19 = int_to_ptr.vmem [resolvable:$true] %s20_s19 }
   0x2   :  { %s532_s21 = smov 8  }
   0x3   :  { %26 = dma.hbm_to_vmem [thread:$0]  %s19_s17, 6144, %s21_s19, [#allocation3], %s531_s20, %s531_s20, %s532_s21  }
   0x4   :  { %528 = dma.done.wait [#allocation3], 6144  }
   0x5   :  { %529 = vsyncadd [#allocation3], 4294961152  ;;  %v53_v0 = vld [vmem:[%s747_s1 + $0x18] sm:$0xff]  ;;  %v52_v1 = vld [vmem:[%s747_s1 + $0x10] sm:$0xff]  ;;  %vm55_vm0 = vcmask 261120   ;;  %vm463_vm1 = vcmask 31744  }
   0x6   :  { %116 = vmatpush.msra.mxu0 %v53_v0  ;;  %v51_v2 = vld [vmem:[%s747_s1 + $0x8] sm:$0xff]  ;;  %v50_v3 = vld [vmem:[%s747_s1] sm:$0xff]  ;;  %v35_v6 = vld [vmem:[%s746_s0 + $0x10] sm:$0xff] }
   0x7   :  { %v33_v4 = vld [vmem:[%s746_s0] sm:$0xff]  ;;  %v34_v5 = vld [vmem:[%s746_s0 + $0x8] sm:$0xff]  ;;  %v36_v7 = vld [vmem:[%s746_s0 + $0x18] sm:$0xff] }
   0x8   :  { %117 = vmatpush.msra.mxu0 %v52_v1  ;;  %v37_v8 = vld [vmem:[%s746_s0 + $0x20] sm:$0xff]  ;;  %v38_v9 = vld [vmem:[%s746_s0 + $0x28] sm:$0xff]  ;;  %v39_v10 = vld [vmem:[%s746_s0 + $0x30] sm:$0xff] }
   0x9   :  { %v40_v11 = vld [vmem:[%s746_s0 + $0x38] sm:$0xff]  ;;  %v41_v12 = vld [vmem:[%s746_s0 + $0x40] sm:$0xff]  ;;  %v199_v14 = vld [vmem:[#allocation2 + $0x70] sm:$0xff] }
   0xa   :  { %118 = vmatpush.msra.mxu0 %v51_v2  ;;  %v200_v13 = vld [vmem:[#allocation2 + $0x78] sm:$0xff]  ;;  %v198_v15 = vld [vmem:[#allocation2 + $0x68] sm:$0xff]  ;;  %v197_v17 = vld [vmem:[#allocation2 + $0x60] sm:$0xff] }
   0xb   :  { %202 = vmatpush.msra.mxu1 %v200_v13  ;;  %v42_v16 = vld [vmem:[%s746_s0 + $0x48] sm:$0xff]  ;;  %v196_v18 = vld [vmem:[#allocation2 + $0x58] sm:$0xff]  ;;  %v195_v19 = vld [vmem:[#allocation2 + $0x50] sm:$0xff] }
   0xc   :  { %119 = vmatpush.msra.mxu0 %v50_v3  ;;  %v194_v20 = vld [vmem:[#allocation2 + $0x48] sm:$0xff]  ;;  %v43_v21 = vld [vmem:[%s746_s0 + $0x50] sm:$0xff]  ;;  %v193_v22 = vld [vmem:[#allocation2 + $0x40] sm:$0xff] }
   0xd   :  { %485 = vmatmul.msk.f32.vlgmr.msra.gmra.mxu0 %vm55_vm0, %v33_v4  ;;  %203 = vmatpush.msra.mxu1 %v199_v14  ;;  %v192_v23 = vld [vmem:[#allocation2 + $0x38] sm:$0xff]  ;;  %v191_v24 = vld [vmem:[#allocation2 + $0x30] sm:$0xff]  ;;  %v190_v25 = vld [vmem:[#allocation2 + $0x28] sm:$0xff] }
   0xe   :  { %v44_v26 = vld [vmem:[%s746_s0 + $0x58] sm:$0xff]  ;;  %v189_v27 = vld [vmem:[#allocation2 + $0x20] sm:$0xff]  ;;  %v187_v29 = vld [vmem:[#allocation2 + $0x10] sm:$0xff] }
   0xf   :  { %204 = vmatpush.msra.mxu1 %v198_v15  ;;  %v188_v28 = vld [vmem:[#allocation2 + $0x18] sm:$0xff]  ;;  %v45_v30 = vld [vmem:[%s746_s0 + $0x60] sm:$0xff]  ;;  %v186_v31 = vld [vmem:[#allocation2 + $0x8] sm:$0xff] }
  0x10   :  { %v185_v32 = vld [vmem:[#allocation2] sm:$0xff]  ;;  %v46_v33 = vld [vmem:[%s746_s0 + $0x68] sm:$0xff]  ;;  %v47_v34 = vld [vmem:[%s746_s0 + $0x70] sm:$0xff] }
  0x11   :  { %205 = vmatpush.msra.mxu1 %v197_v17  ;;  %v48_v35 = vld [vmem:[%s746_s0 + $0x78] sm:$0xff]  ;;  %v639_v36 = vld [vmem:[%s749_s3] sm:$0xf]  ;;  %v297_v4 = vld [vmem:[#allocation2 + $0xf0] sm:$0xff] }
  0x12   :  { %v643_v37 = vperm.slane %v639_v36, 0  ;;  %v298_v1 = vld [vmem:[#allocation2 + $0xf8] sm:$0xff]  ;;  %v292_v13 = vld [vmem:[#allocation2 + $0xc8] sm:$0xff]  ;;  %v291_v14 = vld [vmem:[#allocation2 + $0xc0] sm:$0xff] }
  0x13   :  { %206 = vmatpush.msra.mxu1 %v196_v18  ;;  %300 = vmatpush.msra.mxu2 %v298_v1  ;;  %v290_v15 = vld [vmem:[#allocation2 + $0xb8] sm:$0xff]  ;;  %v289_v18 = vld [vmem:[#allocation2 + $0xb0] sm:$0xff] }
  0x15   :  { %486 = vmatmul.msk.f32.gmra.mxu0 %vm55_vm0, %v34_v5  ;;  %207 = vmatpush.msra.mxu1 %v195_v19 }
  0x16   :  { %301 = vmatpush.msra.mxu2 %v297_v4 }
  0x17   :  { %208 = vmatpush.msra.mxu1 %v194_v20  ;;  %v288_v20 = vld [vmem:[#allocation2 + $0xa8] sm:$0xff] }
  0x19   :  { %209 = vmatpush.msra.mxu1 %v193_v22  ;;  %v286_v22 = vld [vmem:[#allocation2 + $0x98] sm:$0xff] }
  0x1b   :  { %210 = vmatpush.msra.mxu1 %v192_v23 }
  0x1d   :  { %487 = vmatmul.msk.f32.gmra.mxu0 %vm55_vm0, %v35_v6  ;;  %211 = vmatpush.msra.mxu1 %v191_v24  ;;  %v296_v6 = vld [vmem:[#allocation2 + $0xe8] sm:$0xff] }
  0x1e   :  { %302 = vmatpush.msra.mxu2 %v296_v6  ;;  %v396_v6 = vld [vmem:[#allocation2 + $0x178] sm:$0xff] }
  0x1f   :  { %212 = vmatpush.msra.mxu1 %v190_v25  ;;  %v285_v25 = vld [vmem:[#allocation2 + $0x90] sm:$0xff]  ;;  %398 = vmatpush.msra.mxu3 %v396_v6 }
  0x21   :  { %213 = vmatpush.msra.mxu1 %v189_v27  ;;  %v284_v27 = vld [vmem:[#allocation2 + $0x88] sm:$0xff] }
  0x23   :  { %214 = vmatpush.msra.mxu1 %v188_v28  ;;  %v283_v28 = vld [vmem:[#allocation2 + $0x80] sm:$0xff] }
  0x25   :  { %488 = vmatmul.msk.f32.gmra.mxu0 %vm55_vm0, %v36_v7  ;;  %215 = vmatpush.msra.mxu1 %v187_v29  ;;  %v295_v7 = vld [vmem:[#allocation2 + $0xe0] sm:$0xff] }
  0x26   :  { %303 = vmatpush.msra.mxu2 %v295_v7  ;;  %v395_v7 = vld [vmem:[#allocation2 + $0x170] sm:$0xff] }
  0x27   :  { %216 = vmatpush.msra.mxu1 %v186_v31  ;;  %399 = vmatpush.msra.mxu3 %v395_v7 }
  0x29   :  { %217 = vmatpush.msra.mxu1 %v185_v32 }
  0x2d   :  { %489 = vmatmul.msk.f32.gmra.mxu0 %vm55_vm0, %v37_v8  ;;  %v294_v8 = vld [vmem:[#allocation2 + $0xd8] sm:$0xff] }
  0x2e   :  { %304 = vmatpush.msra.mxu2 %v294_v8 }
  0x35   :  { %490 = vmatmul.msk.f32.gmra.mxu0 %vm55_vm0, %v38_v9 }
  0x3d   :  { %491 = vmatmul.msk.f32.gmra.mxu0 %vm55_vm0, %v39_v10 }
  0x45   :  { %492 = vmatmul.msk.f32.gmra.mxu0 %vm55_vm0, %v40_v11  ;;  %v293_v11 = vld [vmem:[#allocation2 + $0xd0] sm:$0xff] }
  0x46   :  { %305 = vmatpush.msra.mxu2 %v293_v11 }
  0x48   :  { %306 = vmatpush.msra.mxu2 %v292_v13  ;;  %v392_v13 = vld [vmem:[#allocation2 + $0x158] sm:$0xff] }
  0x4a   :  { %307 = vmatpush.msra.mxu2 %v291_v14  ;;  %v391_v14 = vld [vmem:[#allocation2 + $0x150] sm:$0xff] }
  0x4c   :  { %308 = vmatpush.msra.mxu2 %v290_v15 }
  0x4d   :  { %493 = vmatmul.msk.f32.gmra.mxu0 %vm55_vm0, %v41_v12 }
  0x4e   :  { %309 = vmatpush.msra.mxu2 %v289_v18 }
  0x50   :  { %310 = vmatpush.msra.mxu2 %v288_v20  ;;  %v388_v20 = vld [vmem:[#allocation2 + $0x138] sm:$0xff] }
  0x55   :  { %494 = vmatmul.msk.f32.gmra.mxu0 %vm55_vm0, %v42_v16 }
  0x5d   :  { %495 = vmatmul.msk.f32.gmra.mxu0 %vm55_vm0, %v43_v21  ;;  %v287_v21 = vld [vmem:[#allocation2 + $0xa0] sm:$0xff] }
  0x5e   :  { %311 = vmatpush.msra.mxu2 %v287_v21  ;;  %v387_v21 = vld [vmem:[#allocation2 + $0x130] sm:$0xff] }
  0x60   :  { %312 = vmatpush.msra.mxu2 %v286_v22  ;;  %v386_v22 = vld [vmem:[#allocation2 + $0x128] sm:$0xff] }
  0x62   :  { %313 = vmatpush.msra.mxu2 %v285_v25  ;;  %v385_v25 = vld [vmem:[#allocation2 + $0x120] sm:$0xff] }
  0x64   :  { %314 = vmatpush.msra.mxu2 %v284_v27  ;;  %v384_v27 = vld [vmem:[#allocation2 + $0x118] sm:$0xff] }
  0x65   :  { %496 = vmatmul.msk.f32.gmra.mxu0 %vm55_vm0, %v44_v26 }
  0x66   :  { %315 = vmatpush.msra.mxu2 %v283_v28  ;;  %v383_v28 = vld [vmem:[#allocation2 + $0x110] sm:$0xff] }
  0x6d   :  { %497 = vmatmul.msk.f32.gmra.mxu0 %vm55_vm0, %v45_v30 }
  0x75   :  { %498 = vmatmul.msk.f32.gmra.mxu0 %vm55_vm0, %v46_v33 }
  0x7d   :  { %499 = vmatmul.msk.f32.gmra.mxu0 %vm55_vm0, %v47_v34 }
  0x85   :  { %500 = vmatmul.msk.f32.gmra.mxu0 %vm55_vm0, %v48_v35 }
  0x8a   :  { %v121_v38 = vpop.f32.mrf.mxu0 }
  0x8b   :  { %v122_v39 = vadd.f32 %v121_v38, %v643_v37 }
  0x8d   :  { %v169_v40 = vmax.f32 %v122_v39, 0.0 }
  0x8f   :  { %218 = vmatmul.f32.vlgmr.msra.gmra.mxu1 %v169_v40  ;;  %v662_v40 = vperm.slane %v639_v36, 1 }
  0x92   :  { %v124_v41 = vpop.f32.mrf.mxu0 }
  0x93   :  { %v125_v42 = vadd.f32 %v124_v41, %v643_v37 }
  0x95   :  { %v170_v43 = vmax.f32 %v125_v42, 0.0 }
  0x97   :  { %221 = vmatmul.f32.gmra.mxu1 %v170_v43 }
  0x9a   :  { %v127_v44 = vpop.f32.mrf.mxu0 }
  0x9b   :  { %v128_v45 = vadd.f32 %v127_v44, %v643_v37 }
  0x9d   :  { %v171_v46 = vmax.f32 %v128_v45, 0.0 }
  0x9f   :  { %224 = vmatmul.f32.gmra.mxu1 %v171_v46 }
  0xa2   :  { %v130_v47 = vpop.f32.mrf.mxu0 }
  0xa3   :  { %v131_v48 = vadd.f32 %v130_v47, %v643_v37 }
  0xa5   :  { %v172_v49 = vmax.f32 %v131_v48, 0.0 }
  0xa7   :  { %227 = vmatmul.f32.gmra.mxu1 %v172_v49 }
  0xaa   :  { %v133_v50 = vpop.f32.mrf.mxu0 }
  0xab   :  { %v134_v51 = vadd.f32 %v133_v50, %v643_v37 }
  0xad   :  { %v173_v52 = vmax.f32 %v134_v51, 0.0 }
  0xaf   :  { %230 = vmatmul.f32.gmra.mxu1 %v173_v52 }
  0xb2   :  { %v136_v53 = vpop.f32.mrf.mxu0 }
  0xb3   :  { %v137_v54 = vadd.f32 %v136_v53, %v643_v37 }
  0xb5   :  { %v174_v55 = vmax.f32 %v137_v54, 0.0 }
  0xb7   :  { %233 = vmatmul.f32.gmra.mxu1 %v174_v55 }
  0xba   :  { %v139_v56 = vpop.f32.mrf.mxu0 }
  0xbb   :  { %v140_v57 = vadd.f32 %v139_v56, %v643_v37 }
  0xbd   :  { %v175_v58 = vmax.f32 %v140_v57, 0.0 }
  0xbf   :  { %236 = vmatmul.f32.gmra.mxu1 %v175_v58 }
  0xc2   :  { %v142_v59 = vpop.f32.mrf.mxu0 }
  0xc3   :  { %v143_v60 = vadd.f32 %v142_v59, %v643_v37 }
  0xc5   :  { %v176_v61 = vmax.f32 %v143_v60, 0.0 }
  0xc7   :  { %239 = vmatmul.f32.gmra.mxu1 %v176_v61 }
  0xca   :  { %v145_v62 = vpop.f32.mrf.mxu0 }
  0xcb   :  { %v146_v63 = vadd.f32 %v145_v62, %v643_v37 }
  0xcd   :  { %v177_v0 = vmax.f32 %v146_v63, 0.0 }
  0xcf   :  { %242 = vmatmul.f32.gmra.mxu1 %v177_v0 }
  0xd2   :  { %v148_v2 = vpop.f32.mrf.mxu0 }
  0xd3   :  { %v149_v3 = vadd.f32 %v148_v2, %v643_v37 }
  0xd5   :  { %v178_v5 = vmax.f32 %v149_v3, 0.0 }
  0xd7   :  { %245 = vmatmul.f32.gmra.mxu1 %v178_v5 }
  0xda   :  { %v151_v9 = vpop.f32.mrf.mxu0 }
  0xdb   :  { %v152_v10 = vadd.f32 %v151_v9, %v643_v37 }
  0xdd   :  { %v179_v12 = vmax.f32 %v152_v10, 0.0  ;;  %v394_v10 = vld [vmem:[#allocation2 + $0x168] sm:$0xff] }
  0xde   :  { %400 = vmatpush.msra.mxu3 %v394_v10 }
  0xdf   :  { %248 = vmatmul.f32.gmra.mxu1 %v179_v12  ;;  %v393_v12 = vld [vmem:[#allocation2 + $0x160] sm:$0xff] }
  0xe0   :  { %401 = vmatpush.msra.mxu3 %v393_v12 }
  0xe2   :  { %v154_v16 = vpop.f32.mrf.mxu0  ;;  %402 = vmatpush.msra.mxu3 %v392_v13 }
  0xe3   :  { %v155_v17 = vadd.f32 %v154_v16, %v643_v37 }
  0xe4   :  { %403 = vmatpush.msra.mxu3 %v391_v14 }
  0xe5   :  { %v180_v19 = vmax.f32 %v155_v17, 0.0  ;;  %v390_v17 = vld [vmem:[#allocation2 + $0x148] sm:$0xff] }
  0xe6   :  { %404 = vmatpush.msra.mxu3 %v390_v17 }
  0xe7   :  { %251 = vmatmul.f32.gmra.mxu1 %v180_v19  ;;  %v389_v19 = vld [vmem:[#allocation2 + $0x140] sm:$0xff] }
  0xe8   :  { %405 = vmatpush.msra.mxu3 %v389_v19 }
  0xea   :  { %v157_v23 = vpop.f32.mrf.mxu0  ;;  %406 = vmatpush.msra.mxu3 %v388_v20 }
  0xeb   :  { %v158_v24 = vadd.f32 %v157_v23, %v643_v37 }
  0xec   :  { %407 = vmatpush.msra.mxu3 %v387_v21 }
  0xed   :  { %v181_v26 = vmax.f32 %v158_v24, 0.0 }
  0xee   :  { %408 = vmatpush.msra.mxu3 %v386_v22 }
  0xef   :  { %254 = vmatmul.f32.gmra.mxu1 %v181_v26 }
  0xf0   :  { %409 = vmatpush.msra.mxu3 %v385_v25 }
  0xf2   :  { %v160_v29 = vpop.f32.mrf.mxu0  ;;  %410 = vmatpush.msra.mxu3 %v384_v27 }
  0xf3   :  { %v161_v30 = vadd.f32 %v160_v29, %v643_v37 }
  0xf4   :  { %411 = vmatpush.msra.mxu3 %v383_v28 }
  0xf5   :  { %v182_v31 = vmax.f32 %v161_v30, 0.0 }
  0xf7   :  { %257 = vmatmul.f32.gmra.mxu1 %v182_v31  ;;  %v382_v31 = vld [vmem:[#allocation2 + $0x108] sm:$0xff] }
  0xf8   :  { %412 = vmatpush.msra.mxu3 %v382_v31 }
  0xfa   :  { %v163_v32 = vpop.f32.mrf.mxu0 }
  0xfb   :  { %v164_v33 = vadd.f32 %v163_v32, %v643_v37 }
  0xfd   :  { %v183_v34 = vmax.f32 %v164_v33, 0.0  ;;  %v381_v33 = vld [vmem:[#allocation2 + $0x100] sm:$0xff] }
  0xfe   :  { %413 = vmatpush.msra.mxu3 %v381_v33 }
  0xff   :  { %260 = vmatmul.f32.gmra.mxu1 %v183_v34 }
 0x102   :  { %v166_v35 = vpop.f32.mrf.mxu0 }
 0x103   :  { %v167_v38 = vadd.f32 %v166_v35, %v643_v37 }
 0x105   :  { %v184_v39 = vmax.f32 %v167_v38, 0.0 }
 0x107   :  { %263 = vmatmul.f32.gmra.mxu1 %v184_v39 }
 0x10c   :  { %v219_v41 = vpop.f32.mrf.mxu1 }
 0x10d   :  { %v220_v42 = vadd.f32 %v219_v41, %v662_v40 }
 0x10f   :  { %v267_v43 = vmax.f32 %v220_v42, 0.0 }
 0x111   :  { %316 = vmatmul.f32.vlgmr.msra.gmra.mxu2 %v267_v43  ;;  %v299_v43 = vperm.slane %v639_v36, 2 }
 0x114   :  { %v222_v44 = vpop.f32.mrf.mxu1 }
 0x115   :  { %v223_v45 = vadd.f32 %v222_v44, %v662_v40 }
 0x117   :  { %v268_v46 = vmax.f32 %v223_v45, 0.0 }
 0x119   :  { %319 = vmatmul.f32.gmra.mxu2 %v268_v46 }
 0x11c   :  { %v225_v47 = vpop.f32.mrf.mxu1 }
 0x11d   :  { %v226_v48 = vadd.f32 %v225_v47, %v662_v40 }
 0x11f   :  { %v269_v49 = vmax.f32 %v226_v48, 0.0 }
 0x121   :  { %322 = vmatmul.f32.gmra.mxu2 %v269_v49 }
 0x124   :  { %v228_v37 = vpop.f32.mrf.mxu1 }
 0x125   :  { %v229_v50 = vadd.f32 %v228_v37, %v662_v40 }
 0x127   :  { %v270_v51 = vmax.f32 %v229_v50, 0.0 }
 0x129   :  { %325 = vmatmul.f32.gmra.mxu2 %v270_v51 }
 0x12c   :  { %v231_v52 = vpop.f32.mrf.mxu1 }
 0x12d   :  { %v232_v53 = vadd.f32 %v231_v52, %v662_v40 }
 0x12f   :  { %v271_v54 = vmax.f32 %v232_v53, 0.0 }
 0x131   :  { %328 = vmatmul.f32.gmra.mxu2 %v271_v54 }
 0x134   :  { %v234_v55 = vpop.f32.mrf.mxu1 }
 0x135   :  { %v235_v56 = vadd.f32 %v234_v55, %v662_v40 }
 0x137   :  { %v272_v57 = vmax.f32 %v235_v56, 0.0 }
 0x139   :  { %331 = vmatmul.f32.gmra.mxu2 %v272_v57 }
 0x13c   :  { %v237_v58 = vpop.f32.mrf.mxu1 }
 0x13d   :  { %v238_v59 = vadd.f32 %v237_v58, %v662_v40 }
 0x13f   :  { %v273_v60 = vmax.f32 %v238_v59, 0.0 }
 0x141   :  { %334 = vmatmul.f32.gmra.mxu2 %v273_v60 }
 0x144   :  { %v240_v61 = vpop.f32.mrf.mxu1 }
 0x145   :  { %v241_v62 = vadd.f32 %v240_v61, %v662_v40 }
 0x147   :  { %v274_v63 = vmax.f32 %v241_v62, 0.0 }
 0x149   :  { %337 = vmatmul.f32.gmra.mxu2 %v274_v63 }
 0x14c   :  { %v243_v0 = vpop.f32.mrf.mxu1 }
 0x14d   :  { %v244_v1 = vadd.f32 %v243_v0, %v662_v40 }
 0x14f   :  { %v275_v2 = vmax.f32 %v244_v1, 0.0 }
 0x151   :  { %340 = vmatmul.f32.gmra.mxu2 %v275_v2 }
 0x154   :  { %v246_v3 = vpop.f32.mrf.mxu1 }
 0x155   :  { %v247_v4 = vadd.f32 %v246_v3, %v662_v40 }
 0x157   :  { %v276_v5 = vmax.f32 %v247_v4, 0.0 }
 0x159   :  { %343 = vmatmul.f32.gmra.mxu2 %v276_v5 }
 0x15c   :  { %v249_v8 = vpop.f32.mrf.mxu1 }
 0x15d   :  { %v250_v9 = vadd.f32 %v249_v8, %v662_v40 }
 0x15f   :  { %v277_v11 = vmax.f32 %v250_v9, 0.0 }
 0x161   :  { %346 = vmatmul.f32.gmra.mxu2 %v277_v11 }
 0x164   :  { %v252_v15 = vpop.f32.mrf.mxu1 }
 0x165   :  { %v253_v16 = vadd.f32 %v252_v15, %v662_v40 }
 0x167   :  { %v278_v18 = vmax.f32 %v253_v16, 0.0 }
 0x169   :  { %349 = vmatmul.f32.gmra.mxu2 %v278_v18 }
 0x16c   :  { %v255_v23 = vpop.f32.mrf.mxu1 }
 0x16d   :  { %v256_v24 = vadd.f32 %v255_v23, %v662_v40 }
 0x16f   :  { %v279_v26 = vmax.f32 %v256_v24, 0.0 }
 0x171   :  { %352 = vmatmul.f32.gmra.mxu2 %v279_v26  ;;  %v397_v26 = vperm.slane %v639_v36, 3 }
 0x174   :  { %v258_v29 = vpop.f32.mrf.mxu1 }
 0x175   :  { %v259_v30 = vadd.f32 %v258_v29, %v662_v40 }
 0x177   :  { %v280_v32 = vmax.f32 %v259_v30, 0.0 }
 0x179   :  { %355 = vmatmul.f32.gmra.mxu2 %v280_v32 }
 0x17c   :  { %v261_v34 = vpop.f32.mrf.mxu1 }
 0x17d   :  { %v262_v35 = vadd.f32 %v261_v34, %v662_v40 }
 0x17f   :  { %v281_v38 = vmax.f32 %v262_v35, 0.0 }
 0x181   :  { %358 = vmatmul.f32.gmra.mxu2 %v281_v38 }
 0x184   :  { %v264_v39 = vpop.f32.mrf.mxu1 }
 0x185   :  { %v265_v41 = vadd.f32 %v264_v39, %v662_v40 }
 0x187   :  { %v282_v42 = vmax.f32 %v265_v41, 0.0 }
 0x189   :  { %361 = vmatmul.f32.gmra.mxu2 %v282_v42 }
 0x194   :  { %v317_v44 = vpop.f32.mrf.mxu2 }
 0x195   :  { %v318_v45 = vadd.f32 %v317_v44, %v299_v43 }
 0x197   :  { %v365_v46 = vmax.f32 %v318_v45, 0.0 }
 0x199   :  { %414 = vmatmul.f32.vlgmr.msra.gmra.mxu3 %v365_v46 }
 0x19c   :  { %v320_v47 = vpop.f32.mrf.mxu2 }
 0x19d   :  { %v321_v48 = vadd.f32 %v320_v47, %v299_v43 }
 0x19f   :  { %v366_v49 = vmax.f32 %v321_v48, 0.0 }
 0x1a1   :  { %417 = vmatmul.f32.gmra.mxu3 %v366_v49 }
 0x1a4   :  { %v323_v37 = vpop.f32.mrf.mxu2 }
 0x1a5   :  { %v324_v50 = vadd.f32 %v323_v37, %v299_v43 }
 0x1a7   :  { %v367_v51 = vmax.f32 %v324_v50, 0.0 }
 0x1a9   :  { %420 = vmatmul.f32.gmra.mxu3 %v367_v51 }
 0x1ac   :  { %v326_v52 = vpop.f32.mrf.mxu2 }
 0x1ad   :  { %v327_v53 = vadd.f32 %v326_v52, %v299_v43 }
 0x1af   :  { %v368_v54 = vmax.f32 %v327_v53, 0.0 }
 0x1b1   :  { %423 = vmatmul.f32.gmra.mxu3 %v368_v54 }
 0x1b4   :  { %v329_v40 = vpop.f32.mrf.mxu2 }
 0x1b5   :  { %v330_v55 = vadd.f32 %v329_v40, %v299_v43 }
 0x1b7   :  { %v369_v56 = vmax.f32 %v330_v55, 0.0 }
 0x1b9   :  { %426 = vmatmul.f32.gmra.mxu3 %v369_v56 }
 0x1bc   :  { %v332_v57 = vpop.f32.mrf.mxu2 }
 0x1bd   :  { %v333_v58 = vadd.f32 %v332_v57, %v299_v43 }
 0x1bf   :  { %v370_v59 = vmax.f32 %v333_v58, 0.0 }
 0x1c1   :  { %429 = vmatmul.f32.gmra.mxu3 %v370_v59 }
 0x1c4   :  { %v335_v60 = vpop.f32.mrf.mxu2 }
 0x1c5   :  { %v336_v61 = vadd.f32 %v335_v60, %v299_v43 }
 0x1c7   :  { %v371_v62 = vmax.f32 %v336_v61, 0.0 }
 0x1c9   :  { %432 = vmatmul.f32.gmra.mxu3 %v371_v62 }
 0x1cc   :  { %v338_v63 = vpop.f32.mrf.mxu2 }
 0x1cd   :  { %v339_v0 = vadd.f32 %v338_v63, %v299_v43 }
 0x1cf   :  { %v372_v1 = vmax.f32 %v339_v0, 0.0 }
 0x1d1   :  { %435 = vmatmul.f32.gmra.mxu3 %v372_v1 }
 0x1d4   :  { %v341_v2 = vpop.f32.mrf.mxu2 }
 0x1d5   :  { %v342_v3 = vadd.f32 %v341_v2, %v299_v43 }
 0x1d7   :  { %v373_v4 = vmax.f32 %v342_v3, 0.0 }
 0x1d9   :  { %438 = vmatmul.f32.gmra.mxu3 %v373_v4 }
 0x1dc   :  { %v344_v5 = vpop.f32.mrf.mxu2 }
 0x1dd   :  { %v345_v6 = vadd.f32 %v344_v5, %v299_v43 }
 0x1df   :  { %v374_v7 = vmax.f32 %v345_v6, 0.0 }
 0x1e1   :  { %441 = vmatmul.f32.gmra.mxu3 %v374_v7 }
 0x1e4   :  { %v347_v8 = vpop.f32.mrf.mxu2 }
 0x1e5   :  { %v348_v9 = vadd.f32 %v347_v8, %v299_v43 }
 0x1e7   :  { %v375_v10 = vmax.f32 %v348_v9, 0.0 }
 0x1e9   :  { %444 = vmatmul.f32.gmra.mxu3 %v375_v10 }
 0x1ec   :  { %v350_v11 = vpop.f32.mrf.mxu2 }
 0x1ed   :  { %v351_v12 = vadd.f32 %v350_v11, %v299_v43 }
 0x1ef   :  { %v376_v13 = vmax.f32 %v351_v12, 0.0 }
 0x1f1   :  { %447 = vmatmul.f32.gmra.mxu3 %v376_v13 }
 0x1f4   :  { %v353_v14 = vpop.f32.mrf.mxu2 }
 0x1f5   :  { %v354_v15 = vadd.f32 %v353_v14, %v299_v43 }
 0x1f7   :  { %v377_v16 = vmax.f32 %v354_v15, 0.0 }
 0x1f9   :  { %450 = vmatmul.f32.gmra.mxu3 %v377_v16 }
 0x1fc   :  { %v356_v17 = vpop.f32.mrf.mxu2 }
 0x1fd   :  { %v357_v18 = vadd.f32 %v356_v17, %v299_v43 }
 0x1ff   :  { %v378_v19 = vmax.f32 %v357_v18, 0.0 }
 0x201   :  { %453 = vmatmul.f32.gmra.mxu3 %v378_v19 }
 0x204   :  { %v359_v20 = vpop.f32.mrf.mxu2 }
 0x205   :  { %v360_v21 = vadd.f32 %v359_v20, %v299_v43 }
 0x207   :  { %v379_v22 = vmax.f32 %v360_v21, 0.0 }
 0x209   :  { %456 = vmatmul.f32.gmra.mxu3 %v379_v22 }
 0x20c   :  { %v362_v23 = vpop.f32.mrf.mxu2 }
 0x20d   :  { %v363_v24 = vadd.f32 %v362_v23, %v299_v43 }
 0x20f   :  { %v380_v25 = vmax.f32 %v363_v24, 0.0 }
 0x211   :  { %459 = vmatmul.f32.gmra.mxu3 %v380_v25 }
 0x21c   :  { %v415_v27 = vpop.f32.mrf.mxu3 }
 0x21d   :  { %v416_v28 = vadd.f32 %v415_v27, %v397_v26 }
 0x21f   :  { %464 = vst.msk [vmem:[%s750_s4] sm:$0xff] %vm463_vm1, %v416_v28 }
 0x224   :  { %v418_v29 = vpop.f32.mrf.mxu3 }
 0x225   :  { %v419_v30 = vadd.f32 %v418_v29, %v397_v26 }
 0x227   :  { %465 = vst.msk [vmem:[%s750_s4 + $0x8] sm:$0xff] %vm463_vm1, %v419_v30 }
 0x22c   :  { %v421_v31 = vpop.f32.mrf.mxu3 }
 0x22d   :  { %v422_v32 = vadd.f32 %v421_v31, %v397_v26 }
 0x22f   :  { %466 = vst.msk [vmem:[%s750_s4 + $0x10] sm:$0xff] %vm463_vm1, %v422_v32 }
 0x234   :  { %v424_v36 = vpop.f32.mrf.mxu3 }
 0x235   :  { %v425_v33 = vadd.f32 %v424_v36, %v397_v26 }
 0x237   :  { %467 = vst.msk [vmem:[%s750_s4 + $0x18] sm:$0xff] %vm463_vm1, %v425_v33 }
 0x23c   :  { %v427_v34 = vpop.f32.mrf.mxu3 }
 0x23d   :  { %v428_v35 = vadd.f32 %v427_v34, %v397_v26 }
 0x23f   :  { %468 = vst.msk [vmem:[%s750_s4 + $0x20] sm:$0xff] %vm463_vm1, %v428_v35 }
 0x244   :  { %v430_v38 = vpop.f32.mrf.mxu3 }
 0x245   :  { %v431_v39 = vadd.f32 %v430_v38, %v397_v26 }
 0x247   :  { %469 = vst.msk [vmem:[%s750_s4 + $0x28] sm:$0xff] %vm463_vm1, %v431_v39 }
 0x24c   :  { %v433_v41 = vpop.f32.mrf.mxu3 }
 0x24d   :  { %v434_v42 = vadd.f32 %v433_v41, %v397_v26 }
 0x24f   :  { %470 = vst.msk [vmem:[%s750_s4 + $0x30] sm:$0xff] %vm463_vm1, %v434_v42 }
 0x254   :  { %v436_v43 = vpop.f32.mrf.mxu3 }
 0x255   :  { %v437_v44 = vadd.f32 %v436_v43, %v397_v26 }
 0x257   :  { %471 = vst.msk [vmem:[%s750_s4 + $0x38] sm:$0xff] %vm463_vm1, %v437_v44 }
 0x25c   :  { %v439_v45 = vpop.f32.mrf.mxu3 }
 0x25d   :  { %v440_v46 = vadd.f32 %v439_v45, %v397_v26 }
 0x25f   :  { %472 = vst.msk [vmem:[%s750_s4 + $0x40] sm:$0xff] %vm463_vm1, %v440_v46 }
 0x264   :  { %v442_v47 = vpop.f32.mrf.mxu3 }
 0x265   :  { %v443_v48 = vadd.f32 %v442_v47, %v397_v26 }
 0x267   :  { %473 = vst.msk [vmem:[%s750_s4 + $0x48] sm:$0xff] %vm463_vm1, %v443_v48 }
 0x26c   :  { %v445_v49 = vpop.f32.mrf.mxu3 }
 0x26d   :  { %v446_v37 = vadd.f32 %v445_v49, %v397_v26 }
 0x26f   :  { %474 = vst.msk [vmem:[%s750_s4 + $0x50] sm:$0xff] %vm463_vm1, %v446_v37 }
 0x274   :  { %v448_v50 = vpop.f32.mrf.mxu3 }
 0x275   :  { %v449_v51 = vadd.f32 %v448_v50, %v397_v26 }
 0x277   :  { %475 = vst.msk [vmem:[%s750_s4 + $0x58] sm:$0xff] %vm463_vm1, %v449_v51 }
 0x27c   :  { %v451_v52 = vpop.f32.mrf.mxu3 }
 0x27d   :  { %v452_v53 = vadd.f32 %v451_v52, %v397_v26 }
 0x27f   :  { %476 = vst.msk [vmem:[%s750_s4 + $0x60] sm:$0xff] %vm463_vm1, %v452_v53 }
 0x284   :  { %v454_v54 = vpop.f32.mrf.mxu3 }
 0x285   :  { %v455_v40 = vadd.f32 %v454_v54, %v397_v26 }
 0x287   :  { %477 = vst.msk [vmem:[%s750_s4 + $0x68] sm:$0xff] %vm463_vm1, %v455_v40 }
 0x28c   :  { %v457_v55 = vpop.f32.mrf.mxu3 }
 0x28d   :  { %v458_v56 = vadd.f32 %v457_v55, %v397_v26 }
 0x28f   :  { %478 = vst.msk [vmem:[%s750_s4 + $0x70] sm:$0xff] %vm463_vm1, %v458_v56 }
 0x294   :  { %v460_v57 = vpop.f32.mrf.mxu3 }
 0x295   :  { %v461_v58 = vadd.f32 %v460_v57, %v397_v26 }
 0x297   :  { %479 = vst.msk [vmem:[%s750_s4 + $0x78] sm:$0xff] %vm463_vm1, %v461_v58 }
 0x298   :  { %484 = vsyncpa [#allocation3], 1 }

</bundles_post_ra>
